<compile_context>
chip_gen: v7x
topology: tpu7x:2x2x1
jax: 0.10.0
libtpu: 0.0.40
codegen_flags: <defaults>
</compile_context>

<pallas_src>
import functools

import numpy as np
import jax
import jax.numpy as jnp
from jax import lax
from jax.experimental import pallas as pl
from jax.experimental.pallas import tpu as pltpu


NEG_MASK = -1e9          # additive mask for non-edges (post-LeakyReLU)
LEAKY_SLOPE = 0.2        # GAT/GDN LeakyReLU slope
BN_EPS = 1e-5


# ----------------------------------------------------------------------------
# Pallas kernel: one block of Bb batch elements per grid step (default Bb = B).
# ----------------------------------------------------------------------------
def gdn_kernel(x_ref, waug_ref, wj_ref, se_ref, te_ref, mask_ref, aff_ref,
               wout_ref, bo_ref, out_ref, *, Bb, N, L, d, mxu_dtype, approx_recip):
    # x_ref    : (1, Bb*N, L)  flat input block (mxu_dtype)
    # waug_ref : (L, d+1)      [ W | W @ a_i ]          (mxu_dtype)
    # wj_ref   : (1, L)        (W @ a_j)^T              (mxu_dtype)
    # se_ref   : (N, 1)        emb @ a_ei  (source-node score bias)
    # te_ref   : (1, N)        (emb @ a_ej)^T (target-node score bias)
    # mask_ref : (N, N)        additive adjacency mask (0 / -1e9)
    # aff_ref  : (2, N, d)     [0]=per-node scale, [1]=per-node shift (BN folded)
    # wout_ref : (1, d)        output head weight (row)
    # bo_ref   : (1, 1)        output head bias (SMEM scalar)
    # out_ref  : (1, 1, Bb*N)  lane-dense output block
    f32 = jnp.float32
    x_flat = x_ref[0]                                               # (Bb*N, L)

    # One fused MXU matmul: node features + source-score column.
    h_aug = jnp.dot(x_flat, waug_ref[...], preferred_element_type=f32)  # (Bb*N, d+1)
    h3 = h_aug[:, :d].reshape(Bb, N, d)                             # (Bb, N, d) f32
    si = h_aug[:, d:d + 1].reshape(Bb, N, 1)                        # (Bb, N, 1) f32

    # Target scores, lane-dense on the node axis: batched matmul with q-len 1.
    x3 = x_flat.reshape(Bb, N, L)                                   # minor dim unchanged
    wj_b = jnp.broadcast_to(wj_ref[...], (Bb, 1, L))
    tj = jnp.einsum('bol,bnl->bon', wj_b, x3,
                    preferred_element_type=f32)                     # (Bb, 1, N)

    # Dense masked attention logits: e[b,i,j] = leaky(si[b,i]+se[i]+tj[b,j]+te[j]) + mask[i,j]
    e = (si + se_ref[...]) + (tj + te_ref[...])                     # (Bb, N, N)
    e = jnp.where(e > 0.0, e, LEAKY_SLOPE * e)                      # LeakyReLU(0.2)
    e = e + mask_ref[...]                                           # non-edges -> -1e9

    m = jnp.max(e, axis=-1, keepdims=True)                          # per-source-node max
    p = jnp.exp(e - m)                                              # masked entries -> 0
    denom = jnp.sum(p, axis=-1, keepdims=True)                      # >= 1 (self edge)
    if approx_recip:
        alpha = p * pl.reciprocal(denom, approx=True)               # EUP, bf16 path
    else:
        alpha = p / denom                                           # exact, f32 path

    # Weighted neighbour aggregation: one batched MXU matmul.
    z = jnp.einsum('bij,bjd->bid', alpha.astype(mxu_dtype), h3.astype(mxu_dtype),
                   preferred_element_type=f32)                      # (Bb, N, d)

    # z*emb + gbias, BatchNorm (eval), ReLU — all folded into scale/shift.
    s = jnp.maximum(z * aff_ref[0] + aff_ref[1], 0.0)               # (Bb, N, d)

    # Output head as one lane-dense row: (1, Bb*N) = w_out . s^T + b_out
    s_flat = s.reshape(Bb * N, d)                                   # minor dim unchanged
    row = lax.dot_general(wout_ref[...], s_flat, (((1,), (1,)), ((), ())),
                          preferred_element_type=f32) + bo_ref[0, 0]
    out_ref[0] = row                                                # full-lane store


# ----------------------------------------------------------------------------
# Wrapper
# ----------------------------------------------------------------------------
def _pick_batch_block(B, N, L, itemsize, vmem_budget=8 << 20):
    """Prefer one fat grid step; only split if the x block would blow VMEM."""
    for c in range(B, 0, -1):
        if B % c == 0 and 2 * c * N * L * itemsize <= vmem_budget:
            return c
    return 1


def gdn_forward(x, params, adj, *, mxu_dtype=jnp.bfloat16, batch_block=None):
    B, N, L = x.shape
    d = params["W"].shape[1]
    f32 = jnp.float32
    mxu_np = np.dtype(mxu_dtype)

    Bb = batch_block if batch_block is not None else _pick_batch_block(
        B, N, L, mxu_np.itemsize)
    assert B % Bb == 0
    G = B // Bb
    BbN = Bb * N

    W = params["W"].astype(f32)
    emb = params["emb"].astype(f32)

    # ---- host-side algebraic folding (exactly equivalent to the module) ----
    w_aug = jnp.concatenate([W, W @ params["att_hi"]], axis=1)            # (L, d+1)
    wj_row = (W @ params["att_hj"]).T                                     # (1, L)
    se_col = (emb @ params["att_ei"]).astype(f32)                         # (N, 1)
    te_row = (emb @ params["att_ej"]).T.astype(f32)                       # (1, N)
    adj_mask = ((1.0 - adj) * NEG_MASK).astype(f32)                       # (N, N)

    bn_scale = params["bn_gamma"] * jax.lax.rsqrt(params["bn_var"] + BN_EPS)
    bn_shift = params["bn_beta"] - params["bn_mean"] * bn_scale
    scale_node = emb * bn_scale                                           # (N, d)
    shift_node = params["gbias"] * emb * bn_scale + bn_shift              # (N, d)
    node_aff = jnp.stack([scale_node, shift_node]).astype(f32)            # (2, N, d)

    w_out_row = params["w_out"].T.astype(f32)                             # (1, d)
    b_out = params["b_out"].reshape(1, 1).astype(f32)                     # SMEM scalar

    # Flat 2-D x blocks (single contiguous DMA tile per step); MXU operands in
    # mxu_dtype, element-wise math stays f32 inside the kernel (v5e safe).
    x_r = x.reshape(G, BbN, L).astype(mxu_dtype)
    w_aug_c = w_aug.astype(mxu_dtype)
    wj_row_c = wj_row.astype(mxu_dtype)

    kernel = functools.partial(
        gdn_kernel, Bb=Bb, N=N, L=L, d=d, mxu_dtype=mxu_dtype,
        approx_recip=(mxu_np != np.dtype(jnp.float32)))

    flops = B * (2 * N * L * (d + 1) + 2 * N * L + 2 * N * N * d
                 + 2 * N * d + 12 * N * N)
    bytes_accessed = int(x_r.size * mxu_np.itemsize + B * N * 4
                         + w_aug_c.size * mxu_np.itemsize
                         + wj_row_c.size * mxu_np.itemsize
                         + (se_col.size + te_row.size + adj_mask.size) * 4
                         + node_aff.size * 4 + w_out_row.size * 4 + 4)
    cost = pl.CostEstimate(flops=int(flops), transcendentals=int(B * N * N),
                           bytes_accessed=bytes_accessed)

    def inv(shape):
        nd = len(shape)
        return pl.BlockSpec(shape, lambda b, nd=nd: (0,) * nd)

    out = pl.pallas_call(
        kernel,
        out_shape=jax.ShapeDtypeStruct((G, 1, BbN), jnp.float32),
        grid=(G,),
        in_specs=[
            pl.BlockSpec((1, BbN, L), lambda b: (b, 0, 0)),         # x (pipelined)
            inv((L, d + 1)),                                        # W_aug
            inv((1, L)),                                            # wj_row
            inv((N, 1)),                                            # se_col
            inv((1, N)),                                            # te_row
            inv((N, N)),                                            # adj mask
            inv((2, N, d)),                                         # node scale/shift
            inv((1, d)),                                            # w_out_row
            pl.BlockSpec(memory_space=pltpu.MemorySpace.SMEM),      # b_out scalar
        ],
        out_specs=pl.BlockSpec((1, 1, BbN), lambda b: (b, 0, 0)),
        compiler_params=pltpu.CompilerParams(
            dimension_semantics=("parallel",) if G > 1 else ("arbitrary",)),
        cost_estimate=cost,
    )(x_r, w_aug_c, wj_row_c, se_col, te_row, adj_mask, node_aff, w_out_row, b_out)

    return out.reshape(B, N)


# ----------------------------------------------------------------------------
# Pure-JAX reference (unfused, per-edge formulation, raw parameters)
# ----------------------------------------------------------------------------
def gdn_reference(x, p, tgt, src, agg):
    emb = p["emb"]

    def one(xb):
        h = xb @ p["W"]
        hj = tgt @ h
        ej = tgt @ emb
        si = h @ p["att_hi"] + emb @ p["att_ei"]
        sj = hj @ p["att_hj"] + ej @ p["att_ej"]
        e = src @ si + sj
        e = jnp.where(e > 0, e, LEAKY_SLOPE * e)
        e = e - jnp.max(e)
        pe = jnp.exp(e)
        alpha = pe / (src @ (agg @ pe))
        z = agg @ (hj * alpha) + p["gbias"]
        s = z * emb
        s = (s - p["bn_mean"]) * jax.lax.rsqrt(p["bn_var"] + BN_EPS) * p["bn_gamma"] + p["bn_beta"]
        s = jnp.maximum(s, 0.0)
        return (s @ p["w_out"] + p["b_out"])[:, 0]

    return jax.vmap(one)(x)


# ----------------------------------------------------------------------------
# Deterministic parameter / edge construction (glue)
# ----------------------------------------------------------------------------
def make_params(key, num_nodes, seq_len, d_hidden):
    ks = jax.random.split(key, 10)
    s = 0.1
    return {
        "emb":      s * jax.random.normal(ks[0], (num_nodes, d_hidden), jnp.float32),
        "W":        s * jax.random.normal(ks[1], (seq_len, d_hidden), jnp.float32),
        "att_hi":   s * jax.random.normal(ks[2], (d_hidden, 1), jnp.float32),
        "att_ei":   s * jax.random.normal(ks[3], (d_hidden, 1), jnp.float32),
        "att_hj":   s * jax.random.normal(ks[4], (d_hidden, 1), jnp.float32),
        "att_ej":   s * jax.random.normal(ks[5], (d_hidden, 1), jnp.float32),
        "gbias":    s * jax.random.normal(ks[6], (1, d_hidden), jnp.float32),
        "bn_gamma": jnp.ones((1, d_hidden), jnp.float32),
        "bn_beta":  jnp.zeros((1, d_hidden), jnp.float32),
        "bn_mean":  jnp.zeros((1, d_hidden), jnp.float32),
        "bn_var":   jnp.ones((1, d_hidden), jnp.float32),
        "w_out":    s * jax.random.normal(ks[7], (d_hidden, 1), jnp.float32),
        "b_out":    s * jax.random.normal(ks[8], (1, 1), jnp.float32),
    }


def make_edges(emb, k):
    """Cosine-similarity top-k edges -> (selectors for reference, adjacency for kernel)."""
    N = emb.shape[0]
    norm = jnp.linalg.norm(emb, axis=-1, keepdims=True)
    sim = (emb @ emb.T) / (norm @ norm.T)
    _, idx = jax.lax.top_k(sim, k)                                        # (N, k)
    tgt_sel = jax.nn.one_hot(idx.reshape(-1), N, dtype=jnp.float32)       # (N*k, N)
    src_sel = jax.nn.one_hot(jnp.repeat(jnp.arange(N), k), N, dtype=jnp.float32)
    agg = src_sel.T                                                       # (N, N*k)
    adj = jnp.zeros((N, N), jnp.float32).at[jnp.arange(N)[:, None], idx].set(1.0)
    return tgt_sel, src_sel, agg, adj


if __name__ == "__main__":
    batch, num_nodes, seq_len, d_hidden, k = 2, 8, 16, 32, 3

    key = jax.random.PRNGKey(0)
    k_x, k_p, k_x2 = jax.random.split(key, 3)
    x = jax.random.normal(k_x, (batch, num_nodes, seq_len), jnp.float32)

    params = make_params(k_p, num_nodes, seq_len, d_hidden)
    tgt_sel, src_sel, agg, adj = make_edges(params["emb"], k)
    ref = gdn_reference(x, params, tgt_sel, src_sel, agg)

    # Default path: single grid step, bf16 MXU operands.
    out = jax.block_until_ready(gdn_forward(x, params, adj))
    assert out.shape == (batch, num_nodes), out.shape
    assert bool(jnp.all(jnp.isfinite(out)))
    assert bool(jnp.allclose(out, ref, rtol=2e-2, atol=2e-2)), (out, ref)

    # Full-f32 MXU path (exact softmax division).
    out_f32 = jax.block_until_ready(gdn_forward(x, params, adj, mxu_dtype=jnp.float32))
    assert bool(jnp.allclose(out_f32, ref, rtol=1e-2, atol=1e-2)), (out_f32, ref)

    # Larger batch: single fat grid step with Bb = 8 (flattened 64-row matmul).
    batch2 = 8
    x2 = jax.random.normal(k_x2, (batch2, num_nodes, seq_len), jnp.float32)
    ref2 = gdn_reference(x2, params, tgt_sel, src_sel, agg)
    out2 = jax.block_until_ready(gdn_forward(x2, params, adj))
    assert out2.shape == (batch2, num_nodes)
    assert bool(jnp.allclose(out2, ref2, rtol=2e-2, atol=2e-2)), (out2, ref2)

    # Explicit batch split (exercises the multi-step grid / pipelined x path).
    out2b = jax.block_until_ready(gdn_forward(x2, params, adj, batch_block=4))
    assert bool(jnp.allclose(out2b, ref2, rtol=2e-2, atol=2e-2)), (out2b, ref2)

    print("KERNEL_OK")
</pallas_src>

<mosaic_0001>
module attributes {stable_mosaic.version = 11 : i64} {
  func.func @gdn_kernel(%arg0: i32, %arg1: memref<1x16x16xbf16, #tpu.memory_space<vmem>>, %arg2: memref<16x33xbf16, #tpu.memory_space<vmem>>, %arg3: memref<1x16xbf16, #tpu.memory_space<vmem>>, %arg4: memref<8x1xf32, #tpu.memory_space<vmem>>, %arg5: memref<1x8xf32, #tpu.memory_space<vmem>>, %arg6: memref<8x8xf32, #tpu.memory_space<vmem>>, %arg7: memref<2x8x32xf32, #tpu.memory_space<vmem>>, %arg8: memref<1x32xf32, #tpu.memory_space<vmem>>, %arg9: memref<1x1xf32, #tpu.memory_space<smem>>, %arg10: memref<1x1x16xf32, #tpu.memory_space<vmem>>) attributes {dimension_semantics = [#tpu.dimension_semantics<arbitrary>], iteration_bounds = array<i64: 1>, scalar_prefetch = 0 : i64, scratch_operands = 0 : i64, tpu.core_type = #tpu.core_type<tc>, window_params = [{transform_indices = @transform_0, window_bounds = array<i64: 1, 16, 16>}, {pipeline_mode = #tpu.pipeline_mode<synchronous>, transform_indices = @transform_1, window_bounds = array<i64: 16, 33>}, {pipeline_mode = #tpu.pipeline_mode<synchronous>, transform_indices = @transform_2, window_bounds = array<i64: 1, 16>}, {pipeline_mode = #tpu.pipeline_mode<synchronous>, transform_indices = @transform_3, window_bounds = array<i64: 8, 1>}, {pipeline_mode = #tpu.pipeline_mode<synchronous>, transform_indices = @transform_4, window_bounds = array<i64: 1, 8>}, {pipeline_mode = #tpu.pipeline_mode<synchronous>, transform_indices = @transform_5, window_bounds = array<i64: 8, 8>}, {pipeline_mode = #tpu.pipeline_mode<synchronous>, transform_indices = @transform_6, window_bounds = array<i64: 2, 8, 32>}, {pipeline_mode = #tpu.pipeline_mode<synchronous>, transform_indices = @transform_7, window_bounds = array<i64: 1, 32>}, {transform_indices = @transform_8, window_bounds = array<i64: 1, 1>}, {transform_indices = @transform_9, window_bounds = array<i64: 1, 1, 16>}]} {
    %c0 = arith.constant 0 : index
    %c0_0 = arith.constant 0 : index
    %c0_1 = arith.constant 0 : index
    %0 = vector.load %arg1[%c0, %c0_0, %c0_1] : memref<1x16x16xbf16, #tpu.memory_space<vmem>>, vector<1x16x16xbf16>
    %1 = vector.shape_cast %0 : vector<1x16x16xbf16> to vector<16x16xbf16>
    %c0_2 = arith.constant 0 : index
    %c0_3 = arith.constant 0 : index
    %2 = vector.load %arg2[%c0_2, %c0_3] : memref<16x33xbf16, #tpu.memory_space<vmem>>, vector<16x33xbf16>
    %cst = arith.constant dense<0.000000e+00> : vector<16x33xf32>
    %3 = tpu.matmul %1, %2, %cst {dimension_numbers = #tpu.dot_dimension_numbers<[1], [0], [0], [1], [0, 0, 1, 1], [], []>} : vector<16x16xbf16>, vector<16x33xbf16>, vector<16x33xf32> -> vector<16x33xf32>
    %4 = vector.extract_strided_slice %3 {offsets = [0, 0], sizes = [16, 32], strides = [1, 1]} : vector<16x33xf32> to vector<16x32xf32>
    %5 = vector.shape_cast %4 : vector<16x32xf32> to vector<2x8x32xf32>
    %6 = vector.extract_strided_slice %3 {offsets = [0, 32], sizes = [16, 1], strides = [1, 1]} : vector<16x33xf32> to vector<16x1xf32>
    %7 = vector.shape_cast %6 : vector<16x1xf32> to vector<2x8x1xf32>
    %8 = vector.shape_cast %1 : vector<16x16xbf16> to vector<2x8x16xbf16>
    %c0_4 = arith.constant 0 : index
    %c0_5 = arith.constant 0 : index
    %9 = vector.load %arg3[%c0_4, %c0_5] : memref<1x16xbf16, #tpu.memory_space<vmem>>, vector<1x16xbf16>
    %10 = vector.shape_cast %9 : vector<1x16xbf16> to vector<1x1x16xbf16>
    %11 = vector.broadcast %10 : vector<1x1x16xbf16> to vector<2x1x16xbf16>
    "tpu.trace_start"() <{level = 10 : i32, message = "bol,bnl->bon"}> : () -> ()
    %cst_6 = arith.constant dense<0.000000e+00> : vector<2x1x8xf32>
    %12 = tpu.matmul %11, %8, %cst_6 {dimension_numbers = #tpu.dot_dimension_numbers<[2], [2], [1], [1], [0, 0, 0, 1, 1, 1], [0], [0]>} : vector<2x1x16xbf16>, vector<2x8x16xbf16>, vector<2x1x8xf32> -> vector<2x1x8xf32>
    "tpu.trace_stop"() : () -> ()
    %c0_7 = arith.constant 0 : index
    %c0_8 = arith.constant 0 : index
    %13 = vector.load %arg4[%c0_7, %c0_8] : memref<8x1xf32, #tpu.memory_space<vmem>>, vector<8x1xf32>
    %14 = vector.shape_cast %13 : vector<8x1xf32> to vector<1x8x1xf32>
    %15 = vector.broadcast %14 : vector<1x8x1xf32> to vector<2x8x1xf32>
    %16 = arith.addf %7, %15 : vector<2x8x1xf32>
    %c0_9 = arith.constant 0 : index
    %c0_10 = arith.constant 0 : index
    %17 = vector.load %arg5[%c0_9, %c0_10] : memref<1x8xf32, #tpu.memory_space<vmem>>, vector<1x8xf32>
    %18 = vector.shape_cast %17 : vector<1x8xf32> to vector<1x1x8xf32>
    %19 = vector.broadcast %18 : vector<1x1x8xf32> to vector<2x1x8xf32>
    %20 = arith.addf %12, %19 : vector<2x1x8xf32>
    %21 = vector.broadcast %16 : vector<2x8x1xf32> to vector<2x8x8xf32>
    %22 = vector.broadcast %20 : vector<2x1x8xf32> to vector<2x8x8xf32>
    %23 = arith.addf %21, %22 : vector<2x8x8xf32>
    %cst_11 = arith.constant 0.000000e+00 : f32
    %24 = vector.broadcast %cst_11 : f32 to vector<2x8x8xf32>
    %25 = arith.cmpf ogt, %23, %24 : vector<2x8x8xf32>
    %cst_12 = arith.constant 2.000000e-01 : f32
    %26 = vector.broadcast %cst_12 : f32 to vector<2x8x8xf32>
    %27 = arith.mulf %26, %23 : vector<2x8x8xf32>
    %28 = arith.select %25, %23, %27 : vector<2x8x8xi1>, vector<2x8x8xf32>
    %c0_13 = arith.constant 0 : index
    %c0_14 = arith.constant 0 : index
    %29 = vector.load %arg6[%c0_13, %c0_14] : memref<8x8xf32, #tpu.memory_space<vmem>>, vector<8x8xf32>
    %30 = vector.shape_cast %29 : vector<8x8xf32> to vector<1x8x8xf32>
    %31 = vector.broadcast %30 : vector<1x8x8xf32> to vector<2x8x8xf32>
    %32 = arith.addf %28, %31 : vector<2x8x8xf32>
    %cst_15 = arith.constant dense<0xFF800000> : vector<2x8xf32>
    %33 = vector.multi_reduction <maximumf>, %32, %cst_15 [2] : vector<2x8x8xf32> to vector<2x8xf32>
    %34 = vector.shape_cast %33 : vector<2x8xf32> to vector<2x8x1xf32>
    %35 = vector.broadcast %34 : vector<2x8x1xf32> to vector<2x8x8xf32>
    %36 = arith.subf %32, %35 : vector<2x8x8xf32>
    %37 = math.exp %36 : vector<2x8x8xf32>
    %cst_16 = arith.constant dense<0.000000e+00> : vector<2x8xf32>
    %38 = vector.multi_reduction <add>, %37, %cst_16 [2] : vector<2x8x8xf32> to vector<2x8xf32>
    %39 = vector.shape_cast %38 : vector<2x8xf32> to vector<2x8x1xf32>
    %40 = tpu.reciprocal %39 {approx = true} : vector<2x8x1xf32> -> vector<2x8x1xf32>
    %41 = vector.broadcast %40 : vector<2x8x1xf32> to vector<2x8x8xf32>
    %42 = arith.mulf %37, %41 : vector<2x8x8xf32>
    %43 = arith.truncf %42 : vector<2x8x8xf32> to vector<2x8x8xbf16>
    %44 = arith.truncf %5 : vector<2x8x32xf32> to vector<2x8x32xbf16>
    "tpu.trace_start"() <{level = 10 : i32, message = "bij,bjd->bid"}> : () -> ()
    %cst_17 = arith.constant dense<0.000000e+00> : vector<2x8x32xf32>
    %45 = tpu.matmul %43, %44, %cst_17 {dimension_numbers = #tpu.dot_dimension_numbers<[2], [1], [1], [2], [0, 0, 0, 1, 1, 2], [0], [0]>} : vector<2x8x8xbf16>, vector<2x8x32xbf16>, vector<2x8x32xf32> -> vector<2x8x32xf32>
    "tpu.trace_stop"() : () -> ()
    %c0_18 = arith.constant 0 : index
    %c0_19 = arith.constant 0 : index
    %c0_20 = arith.constant 0 : index
    %46 = vector.load %arg7[%c0_18, %c0_19, %c0_20] : memref<2x8x32xf32, #tpu.memory_space<vmem>>, vector<1x8x32xf32>
    %47 = vector.shape_cast %46 : vector<1x8x32xf32> to vector<8x32xf32>
    %48 = vector.shape_cast %47 : vector<8x32xf32> to vector<1x8x32xf32>
    %49 = vector.broadcast %48 : vector<1x8x32xf32> to vector<2x8x32xf32>
    %50 = arith.mulf %45, %49 : vector<2x8x32xf32>
    %c1 = arith.constant 1 : index
    %c0_21 = arith.constant 0 : index
    %c0_22 = arith.constant 0 : index
    %51 = vector.load %arg7[%c1, %c0_21, %c0_22] : memref<2x8x32xf32, #tpu.memory_space<vmem>>, vector<1x8x32xf32>
    %52 = vector.shape_cast %51 : vector<1x8x32xf32> to vector<8x32xf32>
    %53 = vector.shape_cast %52 : vector<8x32xf32> to vector<1x8x32xf32>
    %54 = vector.broadcast %53 : vector<1x8x32xf32> to vector<2x8x32xf32>
    %55 = arith.addf %50, %54 : vector<2x8x32xf32>
    %cst_23 = arith.constant 0.000000e+00 : f32
    %56 = vector.broadcast %cst_23 : f32 to vector<2x8x32xf32>
    %57 = arith.maximumf %55, %56 : vector<2x8x32xf32>
    %58 = vector.shape_cast %57 : vector<2x8x32xf32> to vector<16x32xf32>
    %c0_24 = arith.constant 0 : index
    %c0_25 = arith.constant 0 : index
    %59 = vector.load %arg8[%c0_24, %c0_25] : memref<1x32xf32, #tpu.memory_space<vmem>>, vector<1x32xf32>
    %cst_26 = arith.constant dense<0.000000e+00> : vector<1x16xf32>
    %60 = tpu.matmul %59, %58, %cst_26 {dimension_numbers = #tpu.dot_dimension_numbers<[1], [1], [0], [0], [0, 0, 1, 0], [], []>} : vector<1x32xf32>, vector<16x32xf32>, vector<1x16xf32> -> vector<1x16xf32>
    %c0_27 = arith.constant 0 : index
    %c0_28 = arith.constant 0 : index
    %61 = memref.load %arg9[%c0_27, %c0_28] : memref<1x1xf32, #tpu.memory_space<smem>>
    %62 = vector.broadcast %61 : f32 to vector<1x16xf32>
    %63 = arith.addf %60, %62 : vector<1x16xf32>
    %c0_29 = arith.constant 0 : index
    %c0_30 = arith.constant 0 : index
    %c0_31 = arith.constant 0 : index
    %64 = vector.load %arg10[%c0_29, %c0_30, %c0_31] : memref<1x1x16xf32, #tpu.memory_space<vmem>>, vector<1x1x16xf32>
    %65 = vector.shape_cast %64 : vector<1x1x16xf32> to vector<1x16xf32>
    %66 = vector.shape_cast %63 : vector<1x16xf32> to vector<1x1x16xf32>
    tpu.vector_store %arg10[%c0_29, %c0_30, %c0_31], %66 {strides = array<i32>} : memref<1x1x16xf32, #tpu.memory_space<vmem>>, vector<1x1x16xf32>,
    return
  }
  func.func @transform_0(%arg0: i32) -> (i32, i32, i32) {
    %c0_i32 = arith.constant 0 : i32
    %c0_i32_0 = arith.constant 0 : i32
    %c0_i32_1 = arith.constant 0 : i32
    return %arg0, %c0_i32, %c0_i32_0 : i32, i32, i32
  }
  func.func @transform_1(%arg0: i32) -> (i32, i32) {
    %c0_i32 = arith.constant 0 : i32
    %c0_i32_0 = arith.constant 0 : i32
    %c0_i32_1 = arith.constant 0 : i32
    return %c0_i32, %c0_i32_0 : i32, i32
  }
  func.func @transform_2(%arg0: i32) -> (i32, i32) {
    %c0_i32 = arith.constant 0 : i32
    %c0_i32_0 = arith.constant 0 : i32
    %c0_i32_1 = arith.constant 0 : i32
    return %c0_i32, %c0_i32_0 : i32, i32
  }
  func.func @transform_3(%arg0: i32) -> (i32, i32) {
    %c0_i32 = arith.constant 0 : i32
    %c0_i32_0 = arith.constant 0 : i32
    %c0_i32_1 = arith.constant 0 : i32
    return %c0_i32, %c0_i32_0 : i32, i32
  }
  func.func @transform_4(%arg0: i32) -> (i32, i32) {
    %c0_i32 = arith.constant 0 : i32
    %c0_i32_0 = arith.constant 0 : i32
    %c0_i32_1 = arith.constant 0 : i32
    return %c0_i32, %c0_i32_0 : i32, i32
  }
  func.func @transform_5(%arg0: i32) -> (i32, i32) {
    %c0_i32 = arith.constant 0 : i32
    %c0_i32_0 = arith.constant 0 : i32
    %c0_i32_1 = arith.constant 0 : i32
    return %c0_i32, %c0_i32_0 : i32, i32
  }
  func.func @transform_6(%arg0: i32) -> (i32, i32, i32) {
    %c0_i32 = arith.constant 0 : i32
    %c0_i32_0 = arith.constant 0 : i32
    %c0_i32_1 = arith.constant 0 : i32
    %c0_i32_2 = arith.constant 0 : i32
    return %c0_i32, %c0_i32_0, %c0_i32_1 : i32, i32, i32
  }
  func.func @transform_7(%arg0: i32) -> (i32, i32) {
    %c0_i32 = arith.constant 0 : i32
    %c0_i32_0 = arith.constant 0 : i32
    %c0_i32_1 = arith.constant 0 : i32
    return %c0_i32, %c0_i32_0 : i32, i32
  }
  func.func @transform_8(%arg0: i32) -> (i32, i32) {
    %c0_i32 = arith.constant 0 : i32
    %c0_i32_0 = arith.constant 0 : i32
    %c0_i32_1 = arith.constant 0 : i32
    return %c0_i32, %c0_i32_0 : i32, i32
  }
  func.func @transform_9(%arg0: i32) -> (i32, i32, i32) {
    %c0_i32 = arith.constant 0 : i32
    %c0_i32_0 = arith.constant 0 : i32
    %c0_i32_1 = arith.constant 0 : i32
    return %arg0, %c0_i32, %c0_i32_0 : i32, i32, i32
  }
}

</mosaic_0001>

<bundles_post_ra>
// kernel: tpu_custom_call.1
= control target key start
LH: loop header
LB: loop body
LE: loop exit
PB: predicated region body
PF: predicated region fallthrough
CT: control target
= control target key end

     0   :  { %15 = vsyncpa [#allocation4], 0  ;;  %s788_s0 = inlined_call_operand.vmem [shape: bf16[1,16,16], index: 0, kind: input, shape index: {}]   ;;  %s789_s1 = inlined_call_operand.hbm [shape: bf16[16,33], index: 1, kind: input, shape index: {}]   ;;  %s790_s2 = inlined_call_operand.vmem [shape: bf16[1,16], index: 2, kind: input, shape index: {}]   ;;  %s791_s3 = inlined_call_operand.vmem [shape: f32[8,1], index: 3, kind: input, shape index: {}]   ;;  %s792_s4 = inlined_call_operand.vmem [shape: f32[1,8], index: 4, kind: input, shape index: {}]   ;;  %s793_s5 = inlined_call_operand.hbm [shape: f32[8,8], index: 5, kind: input, shape index: {}]   ;;  %s794_s6 = inlined_call_operand.vmem [shape: f32[2,8,32], index: 6, kind: input, shape index: {}]   ;;  %s795_s7 = inlined_call_operand.vmem [shape: f32[1,32], index: 7, kind: input, shape index: {}]   ;;  %s796_s8 = inlined_call_operand.<no memory space> [shape: f32[1,1], index: 8, kind: input, shape index: {}]   ;;  %s797_s9 = inlined_call_operand.hbm [shape: f32[1,1,16], index: 9, kind: output, shape index: {}]  }
   0x1   :  { %16 = vsyncpa [#allocation7], 0 }
   0x2   :  { %17 = vsyncpa [#allocation5], 0  ;;  %s637_s30 = smov [#allocation3]   ;;  %s565_s13 = scalar_lea.hbm %s789_s1, 128 }
   0x3   :  { %s25_s10 = sshll.u32 %s637_s30, 4  ;;  %p566_p0 = scmp.ne.s32.totalorder %s789_s1, %s565_s13  ;;  %s26_s10 = int_to_ptr.vmem [resolvable:$true] %s25_s10 }
   0x4   :  { %p569_p1 = scmp.lt.u32.totalorder %s565_s13, %s789_s1 }
   0x6   :  { %p571_p2 = pnand %p569_p1, %p566_p0 }
   0x8   :  { %574 = shalt.err (!%p571_p2)
}
   0x9   :  { %s575_s18 = scalar_lea.vmem %s26_s10, 128  ;;  %p580_p4 = scmp.lt.s32.totalorder %s26_s10, %s26_s10 }
   0xa   :  { %p576_p3 = scmp.ne.s32.totalorder %s26_s10, %s575_s18  ;;  %p581_p5 = scmp.lt.s32.totalorder %s575_s18, %s575_s18 }
   0xc   :  { %p582_p6 = por %p581_p5, %p580_p4 }
   0xe   :  { %p583_p7 = pnand %p582_p6, %p576_p3 }
  0x10   :  { %586 = shalt.err (!%p583_p7)
}
  0x11   :  { %s638_s19 = smov 64   ;;  %s639_s20 = smov 4  }
  0x12   :  { %31 = dma.hbm_to_vmem [thread:$0]  %s789_s1, 128, %s26_s10, [#allocation4], %s638_s19, %s638_s19, %s639_s20  }
  0x13   :  { %s640_s23 = smov [#allocation6]   ;;  %s587_s27 = scalar_lea.hbm %s793_s5, 128 }
  0x14   :  { %s44_s24 = sshll.u32 %s640_s23, 4  ;;  %p588_p8 = scmp.ne.s32.totalorder %s793_s5, %s587_s27  ;;  %s45_s24 = int_to_ptr.vmem [resolvable:$true] %s44_s24 }
  0x15   :  { %p591_p9 = scmp.lt.u32.totalorder %s587_s27, %s793_s5 }
  0x17   :  { %p593_p10 = pnand %p591_p9, %p588_p8 }
  0x19   :  { %596 = shalt.err (!%p593_p10)
}
  0x1a   :  { %s597_s12 = scalar_lea.vmem %s45_s24, 128  ;;  %p602_p12 = scmp.lt.s32.totalorder %s45_s24, %s45_s24 }
  0x1b   :  { %p598_p11 = scmp.ne.s32.totalorder %s45_s24, %s597_s12  ;;  %p603_p13 = scmp.lt.s32.totalorder %s597_s12, %s597_s12 }
  0x1d   :  { %p604_p0 = por %p603_p13, %p602_p12 }
  0x1f   :  { %p605_p1 = pnand %p604_p0, %p598_p11 }
  0x21   :  { %608 = shalt.err (!%p605_p1)
}
  0x22   :  { %47 = dma.hbm_to_vmem [thread:$0]  %s793_s5, 128, %s45_s24, [#allocation7]  }
  0x23   :  { %631 = dma.done.wait [#allocation4], 128  }
  0x24   :  { %632 = vsyncadd [#allocation4], 4294967168 }
  0x25   :  { %633 = dma.done.wait [#allocation7], 128  }
  0x26   :  { %634 = vsyncadd [#allocation7], 4294967168  ;;  %v641_v0 = vmov 0.0   ;;  %vm642_vm0 = vmmov 0   ;;  %v555_v1 = vld [vmem:[#allocation3] sm:$0xff]   ;;  %vm76_vm1 = vcmask 130048   ;;  %v229_v29 = vlaneseq }
  0x27   :  { %502 = vmatprep.subr.bf16.mxu0 %v641_v0  ;;  %504 = vmatprep.mubr.msk.bf16.mxu0 %vm642_vm0, %v641_v0  ;;  %v61_v2 = vld [vmem:[%s788_s0] sm:$0xf]  ;;  %v62_v3 = vld [vmem:[%s788_s0 + $0x4] sm:$0xf]  ;;  %s643_s18 = smov 32   ;;  %v644_v9 = vmov 32  }
  0x28   :  { %508 = vmatprep.subr.bf16.mxu1 %v641_v0  ;;  %510 = vmatprep.mubr.msk.bf16.mxu1 %vm642_vm0, %v641_v0  ;;  %v122_v4 = vld [vmem:[%s791_s3] sm:$0xff]  ;;  %v478_v5 = vcombine.low %v61_v2, %v62_v3  ;;  %v134_v6 = vsel %vm76_vm1, %v61_v2, 0  ;;  %v177_v8 = vsel %vm76_vm1, %v62_v3, 0  ;;  %vm278_vm2 = vcmask 1043456   ;;  %v245_v42 = vld [vmem:[#allocation6] sm:$0xff]  ;;  %s646_s26 = smov [#allocation8]  }
  0x29   :  { %503 = vmatpush3.bf16.msra.mxu0 %v555_v1  ;;  %124 = vrot.lane.b32.xlu0 %v122_v4, %s643_s18  ;;  %v121_v7 = vld [vmem:[%s790_s2] sm:$0x1]  ;;  %v230_v30 = vshrl.u32 %v229_v29, 7  ;;  %vm248_vm5 = vcmask 64512   ;;  %vm380_vm6 = vcmask 261120   ;;  %s468_s27 = sshll.u32 %s646_s26, 4  ;;  %s469_s27 = int_to_ptr.vmem [resolvable:$true] %s468_s27 }
  0x2a   :  { %514 = vmatprep.subr.bf16.mxu0 %v641_v0  ;;  %509 = vmatpush3.bf16.xpose.msra.mxu1 %v134_v6  ;;  %v129_v31 = vld [vmem:[%s792_s4] sm:$0x1]  ;;  %vm541_vm7 = vmpackc.low %vm380_vm6, %vm380_vm6  ;;  %vm460_vm8 = vcmask 122880   ;;  %s609_s28 = scalar_lea.vmem %s469_s27, 16  ;;  %s613_s29 = scalar_lea.vmem %s469_s27, 32 }
  0x2b   :  { %520 = vmatprep.subr.bf16.mxu1 %v641_v0  ;;  %553 = vset.pattern.permute.xlu0 %v644_v9  ;;  %v231_v33 = vsub.s32 0, %v230_v30  ;;  %v368_v6 = vld [vmem:[%s794_s6] sm:$0xff]  ;;  %p610_p2 = scmp.ne.s32.totalorder %s469_s27, %s609_s28  ;;  %p614_p3 = scmp.lt.s32.totalorder %s469_s27, %s469_s27 }
  0x2c   :  { %505 = vmatmul.mubr.msk.bf16.vlgmr.msra.gmra.mrb[0].mxu0 %vm76_vm1, %v478_v5  ;;  %554 = vset.pattern.permute.xlu1 %v644_v9  ;;  %v645_v5 = vmov 0.0|0.0   ;;  %p615_p4 = scmp.lt.s32.totalorder %s613_s29, %s609_s28 }
  0x2d   :  { %516 = vmatprep.mubr.msk.bf16.mxu0 %vm642_vm0, %v641_v0 }
  0x2e   :  { %p616_p5 = por %p615_p4, %p614_p3 }
  0x30   :  { %p617_p6 = pnand %p616_p5, %p610_p2 }
  0x31   :  { %511 = vmatmul.mubr.msk.bf16.vlgmr.msra.gmra.mrb[0].mxu1 %vm76_vm1, %v121_v7 }
  0x32   :  { %515 = vmatpush3.bf16.xpose.msra.mxu0 %v177_v8  ;;  %522 = vmatprep.mubr.msk.bf16.mxu1 %vm642_vm0, %v641_v0  ;;  %v485_v8 = vld [vmem:[%s794_s6 + $0x8] sm:$0xff] }
  0x33   :  { %526 = vmatprep.subr.bf16.mxu0 %v641_v0 }
  0x39   :  { %517 = vmatmul.mubr.msk.bf16.vlgmr.msra.gmra.mrb[4].mxu0 %vm76_vm1, %v121_v7 }
  0x3a   :  { %528 = vmatprep.mubr.msk.bf16.mxu0 %vm642_vm0, %v641_v0 }
  0x9b   :  { %v125_v10 = vpop.permute.xlu0 %124 }
  0xff   :  { %v114_v11 = vpop.f32.mrb[0].mxu0 }
 0x100   :  { %v127_v12 = vadd.f32 %v125_v10, %v114_v11  ;;  %v273_v13 = vpack.c.bf16 %v114_v11, %v114_v11  ;;  %v506_v14 = vpop.f32.mrb[1].mxu0 }
 0x101   :  { %v117_v15 = vpop.f32.mrb[2].mxu0 }
 0x102   :  { %v274_v16 = vpack.c.bf16 %v117_v15, %v117_v15  ;;  %221 = vperm.xlu0 %553, %v127_v12   ;;  %v507_v17 = vpop.f32.mrb[3].mxu0  ;;  %v280_v18 = vsel %vm278_vm2, %v273_v13, 0  ;;  %v128_v19 = vadd.f32 %v125_v10, %v117_v15 }
 0x103   :  { %521 = vmatpush3.bf16.msra.mxu1 %v280_v18 }
 0x104   :  { %226 = vperm.xlu1 %554, %v128_v19   ;;  %v326_v20 = vsel %vm278_vm2, %v274_v16, 0  ;;  %v170_v21 = vpop.f32.mrb[0].mxu1  ;;  %539 = vmatprep.subr.bf16.mxu1 %v645_v5 }
 0x105   :  { %527 = vmatpush3.bf16.msra.mxu0 %v326_v20  ;;  %v512_v22 = vpop.f32.mrb[1].mxu1  ;;  %v171_v32 = vadd.f32 %v170_v21, %v129_v31 }
 0x106   :  { %v173_v23 = vpop.f32.mrb[2].mxu1  ;;  %v377_v22 = vld [vmem:[%s795_s7] sm:$0x1] }
 0x107   :  { %v513_v24 = vpop.f32.mrb[3].mxu1  ;;  %v232_v35 = vrot.slane %v171_v32, %v231_v33  ;;  %v379_v23 = vstv %s796_s8 }
 0x10c   :  { %v213_v25 = vpop.f32.mrb[4].mxu0 }
 0x10d   :  { %v518_v26 = vpop.f32.mrb[5].mxu0  ;;  %v214_v34 = vadd.f32 %v213_v25, %v129_v31 }
 0x10e   :  { %v216_v27 = vpop.f32.mrb[6].mxu0 }
 0x10f   :  { %v519_v28 = vpop.f32.mrb[7].mxu0  ;;  %v236_v36 = vrot.slane %v214_v34, %v231_v33 }
 0x181   :  { %v222_v37 = vpop.permute.xlu0 %221 }
 0x182   :  { %v237_v38 = vadd.f32 %v232_v35, %v222_v37 }
 0x183   :  { %v227_v39 = vpop.permute.xlu1 %226 }
 0x184   :  { %vm239_vm3 = vcmp.gt.f32.partialorder %v237_v38, 0.0  ;;  %v241_v40 = vmul.f32 0.2, %v237_v38  ;;  %v238_v41 = vadd.f32 %v236_v36, %v227_v39 }
 0x186   :  { %vm240_vm4 = vcmp.gt.f32.partialorder %v238_v41, 0.0  ;;  %v242_v43 = vmul.f32 0.2, %v238_v41  ;;  %v243_v44 = vsel %vm239_vm3, %v237_v38, %v241_v40 }
 0x187   :  { %v246_v45 = vadd.f32 %v245_v42, %v243_v44 }
 0x188   :  { %v244_v46 = vsel %vm240_vm4, %v238_v41, %v242_v43 }
 0x189   :  { %v249_v47 = vsel %vm248_vm5, %v246_v45, -inf  ;;  %v247_v48 = vadd.f32 %v245_v42, %v244_v46 }
 0x18a   :  { %250 = vmax.xlane.f32.xlu1 %v249_v47 }
 0x18b   :  { %v252_v49 = vsel %vm248_vm5, %v247_v48, -inf }
 0x18c   :  { %253 = vmax.xlane.f32.xlu0 %v252_v49 }
 0x217   :  { %v251_v50 = vpop.xlane.xlu1 %250 }
 0x218   :  { %v255_v51 = vsub.f32 %v246_v45, %v251_v50 }
 0x219   :  { %v254_v52 = vpop.xlane.xlu0 %253 }
 0x21a   :  { %v257_v53 = vmul.f32 1.442695, %v255_v51  ;;  %v256_v54 = vsub.f32 %v247_v48, %v254_v52 }
 0x21c   :  { %557 = vpow2.f32 %v257_v53  ;;  %v259_v55 = vmul.f32 1.442695, %v256_v54 }
 0x21e   :  { %559 = vpow2.f32 %v259_v55 }
 0x226   :  { %v558_v56 = vpop.eup %557 }
 0x227   :  { %v261_v57 = vsel %vm248_vm5, %v558_v56, 0.0 }
 0x228   :  { %v560_v58 = vpop.eup %559  ;;  %262 = vadd.xlane.f32.xlu1 %v261_v57 }
 0x229   :  { %v264_v59 = vsel %vm248_vm5, %v560_v58, 0.0 }
 0x22a   :  { %265 = vadd.xlane.f32.xlu0 %v264_v59 }
 0x2b5   :  { %v263_v60 = vpop.xlane.xlu1 %262 }
 0x2b6   :  { %561 = vrcp.f32 %v263_v60 }
 0x2b7   :  { %v266_v61 = vpop.xlane.xlu0 %265 }
 0x2b8   :  { %563 = vrcp.f32 %v266_v61 }
 0x2c0   :  { %v562_v62 = vpop.eup %561 }
 0x2c1   :  { %v269_v63 = vmul.f32 %v562_v62, %v558_v56 }
 0x2c2   :  { %v564_v1 = vpop.eup %563 }
 0x2c3   :  { %v271_v2 = vpack.c.bf16 %v269_v63, %v269_v63  ;;  %v270_v3 = vmul.f32 %v564_v1, %v560_v58 }
 0x2c5   :  { %v272_v4 = vpack.c.bf16 %v270_v3, %v270_v3  ;;  %523 = vmatmul.mubr.msk.bf16.vlgmr.msra.gmra.mrb[4].mxu1 %vm248_vm5, %v271_v2 }
 0x2c6   :  { %536 = vmatprep.mubr.msk.f32.mxu1 %vm642_vm0, %v641_v0 }
 0x2c7   :  { %529 = vmatmul.mubr.msk.bf16.vlgmr.msra.gmra.mrb[8].mxu0 %vm248_vm5, %v272_v4 }
 0x398   :  { %v316_v7 = vpop.f32.mrb[4].mxu1 }
 0x399   :  { %v369_v9 = vmul.f32 %v368_v6, %v316_v7  ;;  %v524_v10 = vpop.f32.mrb[5].mxu1 }
 0x39a   :  { %v319_v11 = vpop.f32.mrb[6].mxu1  ;;  %v362_v12 = vpop.f32.mrb[8].mxu0 }
 0x39b   :  { %v373_v13 = vadd.f32 %v485_v8, %v369_v9  ;;  %v370_v14 = vmul.f32 %v368_v6, %v362_v12  ;;  %v525_v0 = vpop.f32.mrb[7].mxu1  ;;  %v530_v15 = vpop.f32.mrb[9].mxu0 }
 0x39c   :  { %v365_v16 = vpop.f32.mrb[10].mxu0 }
 0x39d   :  { %v374_v17 = vadd.f32 %v485_v8, %v370_v14  ;;  %v531_v18 = vpop.f32.mrb[11].mxu0  ;;  %v375_v19 = vmax.f32 %v373_v13, 0.0 }
 0x39f   :  { %v376_v20 = vmax.f32 %v374_v17, 0.0 }
 0x3a1   :  { %v540_v21 = vpack.c.bf16 %v376_v20, %v375_v19 }
 0x3a3   :  { %542 = vmatpush3.bf16.xpose.msk.msra.mxu1 %vm541_vm7, %v540_v21 }
 0x3aa   :  { %537 = vmatmul.mubr.msk.f32.vlgmr.msra.gmra.mrb[8].mxu1 %vm380_vm6, %v377_v22 }
 0x47d   :  { %v456_v24 = vpop.f32.mrb[8].mxu1 }
 0x47e   :  { %v457_v25 = vadd.f32 %v456_v24, %v379_v23  ;;  %v538_v26 = vpop.f32.mrb[9].mxu1 }
 0x480   :  { %461 = vst.msk [vmem:[#allocation8] sm:$0x1] %vm460_vm8, %v457_v25 }
 0x481   :  { %620 = shalt.err (!%p617_p6)
}
 0x482   :  { %s621_s8 = scalar_lea.hbm %s797_s9, 16 }
 0x483   :  { %p622_p7 = scmp.ne.s32.totalorder %s797_s9, %s621_s8  ;;  %p625_p8 = scmp.lt.u32.totalorder %s621_s8, %s797_s9 }
 0x485   :  { %p627_p9 = pnand %p625_p8, %p622_p7 }
 0x487   :  { %630 = shalt.err (!%p627_p9)
}
 0x488   :  { %471 = dma.vmem_to_hbm [thread:$0]  %s469_s27, 16, %s797_s9, [#allocation5]  }
 0x489   :  { %635 = dma.done.wait [#allocation5], 16  }
 0x48a   :  { %636 = vsyncadd [#allocation5], 4294967280 }
 0x48b   :  { %475 = vsyncpa [#allocation4], 1 }
 0x48c   :  { %476 = vsyncpa [#allocation7], 1 }
 0x48d   :  { %477 = vsyncpa [#allocation5], 1 }

</bundles_post_ra>
